<compile_context>
chip_gen: v5e
topology: v5e:2x2
jax: 0.10.0
libtpu: 0.0.40
codegen_flags: <defaults>
</compile_context>

<pallas_src>
import functools

import jax
import jax.numpy as jnp
from jax.experimental import pallas as pl
from jax.experimental.pallas import tpu as pltpu

EPS = 1e-10


def _ce_kernel(x_ref, y_ref, nll_ref, *, tile_n, n_total):
    """Per-tile target-class negative log-likelihood.

    x_ref   : (TILE_N, C)  logits (VMEM), ragged last tile reads garbage rows
    y_ref   : (TILE_N, 1)  int32 labels (VMEM)
    nll_ref : (TILE_N, 1)  f32 per-row -log(softmax(x)[y] + eps); 0 for
                           ragged / out-of-batch rows.
    """
    i = pl.program_id(0)

    x = x_ref[...].astype(jnp.float32)                        # (TILE_N, C)
    y = y_ref[...]                                            # (TILE_N, 1)

    # Row-stable softmax pieces. Only the target-class probability is needed,
    # so no full-width divide / log is ever issued.
    m = jnp.max(x, axis=1, keepdims=True)                     # (TILE_N, 1)

    # Gather the target logit with a single fused select+reduce (no one-hot
    # materialization, no gather on TPU).
    cols = jax.lax.broadcasted_iota(jnp.int32, x.shape, 1)    # (TILE_N, C)
    x_y = jnp.sum(jnp.where(cols == y, x, 0.0), axis=1, keepdims=True)

    e = jnp.exp(x - m)                                        # (TILE_N, C)
    denom = jnp.sum(e, axis=1, keepdims=True)                 # (TILE_N, 1)

    # Exactly log(softmax(x)[y] + eps): eps added AFTER the division, matching
    # the reference (do not switch to the log-sum-exp identity).
    p_y = jnp.exp(x_y - m) / denom                            # (TILE_N, 1)
    nll = -jnp.log(p_y + EPS)                                 # (TILE_N, 1)

    # Ragged last tile: out-of-batch rows hold unspecified data (possibly
    # NaN/inf after exp), so mask with where (NaN-safe), not a multiply.
    row = jax.lax.broadcasted_iota(jnp.int32, (tile_n, 1), 0) + i * tile_n
    nll_ref[...] = jnp.where(row < n_total, nll, 0.0)


def _vmem_capacity_bytes():
    """Physical VMEM per TensorCore; conservative fallback if query fails."""
    try:
        cap = int(pltpu.get_tpu_info().vmem_capacity_bytes)
        if cap > 0:
            return min(cap, 128 * 1024 * 1024)
    except Exception:
        pass
    return 64 * 1024 * 1024          # v7x has the smallest VMEM (64 MiB/TC)


def _pick_tile_n(n, c, in_itemsize):
    """Pick the batch tile so the double-buffered input block + f32
    temporaries use a large, generation-aware fraction of VMEM."""
    cap = _vmem_capacity_bytes()
    budget = int(cap * 0.45)                     # leave room for Mosaic/internals
    c_lanes = ((c + 127) // 128) * 128           # lane-padded width inside vregs
    # 2x input block (double-buffered) + ~4 f32 full-width temporaries.
    per_row = c_lanes * (2 * in_itemsize + 4 * 4)
    tile = budget // per_row
    # Sublane packing: rows per 32-bit sublane group (8 f32 / 16 bf16 / 32 i8).
    packing = max(8, 32 // max(1, in_itemsize))
    tile = max(packing, min(8192, (tile // packing) * packing))
    # Never larger than the (packing-aligned) batch itself.
    tile = min(tile, ((n + packing - 1) // packing) * packing)
    return max(packing, tile), cap


def cross_entropy_loss(x, y):
    """x: (N, C) float logits; y: (N,) integer labels. Returns scalar f32."""
    assert y.ndim == 1, "Input true label should be 1 dim"
    n, c = x.shape
    y = y.astype(jnp.int32).reshape(n, 1)

    tile_n, vmem_cap = _pick_tile_n(n, c, x.dtype.itemsize)
    grid = (pl.cdiv(n, tile_n),)                 # ragged last tile, no padding

    nll = pl.pallas_call(
        functools.partial(_ce_kernel, tile_n=tile_n, n_total=n),
        out_shape=jax.ShapeDtypeStruct((n, 1), jnp.float32),
        grid=grid,
        in_specs=[
            # Full-C block (block dim == array dim satisfies the layout rule).
            pl.BlockSpec((tile_n, c), lambda i: (i, 0)),
            pl.BlockSpec((tile_n, 1), lambda i: (i, 0)),
        ],
        out_specs=pl.BlockSpec((tile_n, 1), lambda i: (i, 0)),
        compiler_params=pltpu.CompilerParams(
            dimension_semantics=("parallel",),
            vmem_limit_bytes=int(vmem_cap * 0.8),
        ),
    )(x, y)

    # Tiny reduction over per-row NLLs; divide by the TRUE batch size.
    return jnp.sum(nll) / jnp.float32(n)


def _reference(x, y):
    # Pure-JAX reference mirroring the Mytorch forward exactly.
    x = x.astype(jnp.float32)
    soft = jax.nn.softmax(x, axis=1)
    onehot = jax.nn.one_hot(y, x.shape[1], dtype=jnp.float32)
    return -jnp.sum(onehot * jnp.log(soft + EPS)) / x.shape[0]


if __name__ == "__main__":
    key = jax.random.PRNGKey(0)
    kx, ky = jax.random.split(key)

    N, C = 8, 32   # batch=8 samples, 32 classes
    x = jax.random.normal(kx, (N, C), dtype=jnp.float32)
    y = jax.random.randint(ky, (N,), 0, C, dtype=jnp.int32)

    loss = cross_entropy_loss(x, y)
    jax.block_until_ready(loss)

    ref = _reference(x, y)
    assert jnp.allclose(loss, ref, atol=1e-5, rtol=1e-5), (loss, ref)

    print("KERNEL_OK")
</pallas_src>

<mosaic_0001>
module attributes {stable_mosaic.version = 11 : i64} {
  func.func @_ce_kernel(%arg0: i32, %arg1: memref<8x32xf32, #tpu.memory_space<vmem>>, %arg2: memref<8x1xi32, #tpu.memory_space<vmem>>, %arg3: memref<8x1xf32, #tpu.memory_space<vmem>>) attributes {dimension_semantics = [#tpu.dimension_semantics<parallel>], iteration_bounds = array<i64: 1>, scalar_prefetch = 0 : i64, scratch_operands = 0 : i64, tpu.core_type = #tpu.core_type<tc>, window_params = [{transform_indices = @transform_0, window_bounds = array<i64: 8, 32>}, {transform_indices = @transform_1, window_bounds = array<i64: 8, 1>}, {transform_indices = @transform_2, window_bounds = array<i64: 8, 1>}]} {
    %c0 = arith.constant 0 : index
    %c0_0 = arith.constant 0 : index
    %0 = vector.load %arg1[%c0, %c0_0] : memref<8x32xf32, #tpu.memory_space<vmem>>, vector<8x32xf32>
    %c0_1 = arith.constant 0 : index
    %c0_2 = arith.constant 0 : index
    %1 = vector.load %arg2[%c0_1, %c0_2] : memref<8x1xi32, #tpu.memory_space<vmem>>, vector<8x1xi32>
    %cst = arith.constant dense<0xFF800000> : vector<8xf32>
    %2 = vector.multi_reduction <maximumf>, %0, %cst [1] : vector<8x32xf32> to vector<8xf32>
    %3 = vector.shape_cast %2 : vector<8xf32> to vector<8x1xf32>
    %4 = tpu.iota {dimensions = array<i32: 1>} : vector<8x32xi32>
    %5 = vector.broadcast %1 : vector<8x1xi32> to vector<8x32xi32>
    %6 = arith.cmpi eq, %4, %5 : vector<8x32xi32>
    %cst_3 = arith.constant 0.000000e+00 : f32
    %7 = vector.broadcast %cst_3 : f32 to vector<8x32xf32>
    %8 = arith.select %6, %0, %7 : vector<8x32xi1>, vector<8x32xf32>
    %cst_4 = arith.constant dense<0.000000e+00> : vector<8xf32>
    %9 = vector.multi_reduction <add>, %8, %cst_4 [1] : vector<8x32xf32> to vector<8xf32>
    %10 = vector.shape_cast %9 : vector<8xf32> to vector<8x1xf32>
    %11 = vector.broadcast %3 : vector<8x1xf32> to vector<8x32xf32>
    %12 = arith.subf %0, %11 : vector<8x32xf32>
    %13 = math.exp %12 : vector<8x32xf32>
    %cst_5 = arith.constant dense<0.000000e+00> : vector<8xf32>
    %14 = vector.multi_reduction <add>, %13, %cst_5 [1] : vector<8x32xf32> to vector<8xf32>
    %15 = vector.shape_cast %14 : vector<8xf32> to vector<8x1xf32>
    %16 = arith.subf %10, %3 : vector<8x1xf32>
    %17 = math.exp %16 : vector<8x1xf32>
    %18 = arith.divf %17, %15 : vector<8x1xf32>
    %cst_6 = arith.constant 1.000000e-10 : f32
    %19 = vector.broadcast %cst_6 : f32 to vector<8x1xf32>
    %20 = arith.addf %18, %19 : vector<8x1xf32>
    %21 = math.log %20 : vector<8x1xf32>
    %cst_7 = arith.constant 0.000000e+00 : f32
    %22 = vector.broadcast %cst_7 : f32 to vector<8x1xf32>
    %23 = arith.subf %22, %21 : vector<8x1xf32>
    %24 = tpu.iota {dimensions = array<i32: 0>} : vector<8x1xi32>
    %c8_i32 = arith.constant 8 : i32
    %25 = arith.muli %arg0, %c8_i32 : i32
    %26 = vector.broadcast %25 : i32 to vector<8x1xi32>
    %27 = arith.addi %24, %26 : vector<8x1xi32>
    %c8_i32_8 = arith.constant 8 : i32
    %28 = vector.broadcast %c8_i32_8 : i32 to vector<8x1xi32>
    %29 = arith.cmpi slt, %27, %28 : vector<8x1xi32>
    %cst_9 = arith.constant 0.000000e+00 : f32
    %30 = vector.broadcast %cst_9 : f32 to vector<8x1xf32>
    %31 = arith.select %29, %23, %30 : vector<8x1xi1>, vector<8x1xf32>
    %c0_10 = arith.constant 0 : index
    %c0_11 = arith.constant 0 : index
    %32 = vector.load %arg3[%c0_10, %c0_11] : memref<8x1xf32, #tpu.memory_space<vmem>>, vector<8x1xf32>
    tpu.vector_store %arg3[%c0_10, %c0_11], %31 {strides = array<i32>} : memref<8x1xf32, #tpu.memory_space<vmem>>, vector<8x1xf32>,
    return
  }
  func.func @transform_0(%arg0: i32) -> (i32, i32) {
    %c0_i32 = arith.constant 0 : i32
    %c0_i32_0 = arith.constant 0 : i32
    return %arg0, %c0_i32 : i32, i32
  }
  func.func @transform_1(%arg0: i32) -> (i32, i32) {
    %c0_i32 = arith.constant 0 : i32
    %c0_i32_0 = arith.constant 0 : i32
    return %arg0, %c0_i32 : i32, i32
  }
  func.func @transform_2(%arg0: i32) -> (i32, i32) {
    %c0_i32 = arith.constant 0 : i32
    %c0_i32_0 = arith.constant 0 : i32
    return %arg0, %c0_i32 : i32, i32
  }
}

</mosaic_0001>

<bundles_post_ra>
// kernel: tpu_custom_call.1
= control target key start
LH: loop header
LB: loop body
LE: loop exit
PB: predicated region body
PF: predicated region fallthrough
CT: control target
= control target key end

     0   :  { %vm13_vm0 = vcmask 261120   ;;  %v78_v1 = vmov 0   ;;  %v17_v9 = vlaneseq  ;;  %vm62_vm6 = vcmask 7168   ;;  %s106_s0 = inlined_call_operand.vmem [shape: f32[8,32], index: 0, kind: input, shape index: {}]   ;;  %s107_s1 = inlined_call_operand.vmem [shape: s32[8,1], index: 1, kind: input, shape index: {}]   ;;  %s108_s2 = inlined_call_operand.vmem [shape: f32[8,1], index: 2, kind: output, shape index: {}]  }
   0x1   :  { %v11_v0 = vld [vmem:[%s106_s0] sm:$0xff]  ;;  %69 = vset.pattern.permute.xlu0 %v78_v1 }
   0x2   :  { %v14_v2 = vsel %vm13_vm0, %v11_v0, -inf  ;;  %v12_v3 = vld [vmem:[%s107_s1] sm:$0xff]  ;;  %v18_v10 = vand.u32 127, %v17_v9 }
   0x3   :  { %15 = vmax.xlane.f32.xlu0 %v14_v2 }
  0x17   :  { %20 = vperm.xlu0 %69, %v12_v3  }
  0x76   :  { %v16_v4 = vpop.xlane.xlu0 %15 }
  0x77   :  { %v27_v5 = vsub.f32 %v11_v0, %v16_v4 }
  0x79   :  { %v28_v6 = vmul.f32 1.442695, %v27_v5 }
  0x7b   :  { %70 = vpow2.f32 %v28_v6 }
  0x81   :  { %v71_v7 = vpop.eup %70 }
  0x82   :  { %v30_v8 = vsel %vm13_vm0, %v71_v7, 0.0 }
  0x83   :  { %31 = vadd.xlane.f32.xlu1 %v30_v8 }
  0x89   :  { %v21_v11 = vpop.permute.xlu0 %20 }
  0x8a   :  { %vm22_vm1 = vcmp.eq.s32.totalorder %v18_v10, %v21_v11 }
  0x8b   :  { %v23_v12 = vsel %vm22_vm1, %v11_v0, 0.0 }
  0x8c   :  { %v24_v13 = vsel %vm13_vm0, %v23_v12, 0.0 }
  0x8d   :  { %25 = vadd.xlane.f32.xlu1 %v24_v13 }
  0xf6   :  { %v32_v14 = vpop.xlane.xlu1 %31 }
  0xf7   :  { %72 = vrcp.f32 %v32_v14  ;;  %v47_v23 = vand.u32 2147483648, %v32_v14  ;;  %vm41_vm3 = vweird.f32 %v32_v14  ;;  %v45_v24 = vand.u32 2147483647, %v32_v14 }
  0xf9   :  { %v48_v26 = vor.u32 1.1754944e-38, %v47_v23  ;;  %vm46_vm5 = vcmp.eq.f32.partialorder %v45_v24, 8.507059e+37 }
  0xfd   :  { %v73_v15 = vpop.eup %72 }
  0xfe   :  { %v37_v16 = vmul.f32 %v73_v15, %v32_v14  ;;  %vm42_vm2 = vweird.f32 %v73_v15 }
  0xff   :  { %vm43_vm4 = vmor %vm41_vm3, %vm42_vm2 }
 0x100   :  { %v38_v17 = vsub.f32 1.0, %v37_v16  ;;  %v26_v18 = vpop.xlane.xlu1 %25 }
 0x101   :  { %v33_v19 = vsub.f32 %v26_v18, %v16_v4 }
 0x102   :  { %v39_v20 = vmul.f32 %v73_v15, %v38_v17 }
 0x103   :  { %v34_v21 = vmul.f32 1.442695, %v33_v19 }
 0x104   :  { %v40_v22 = vadd.f32 %v73_v15, %v39_v20 }
 0x105   :  { %74 = vpow2.f32 %v34_v21 }
 0x106   :  { %v44_v25 = vsel %vm43_vm4, %v73_v15, %v40_v22 }
 0x107   :  { %v49_v28 = vsel %vm46_vm5, %v48_v26, %v44_v25 }
 0x10b   :  { %v75_v27 = vpop.eup %74 }
 0x10c   :  { %v50_v29 = vmul.f32 %v75_v27, %v49_v28 }
 0x10e   :  { %v51_v30 = vadd.f32 1e-10, %v50_v29 }
 0x110   :  { %76 = vlog2.f32 %v51_v30 }
 0x116   :  { %v77_v31 = vpop.eup %76 }
 0x117   :  { %v53_v32 = vmul.f32 0.6931472, %v77_v31 }
 0x119   :  { %v54_v33 = vsub.f32 0.0, %v53_v32 }
 0x11b   :  { %63 = vst.msk [vmem:[%s108_s2] sm:$0xff] %vm62_vm6, %v54_v33 }

</bundles_post_ra>
